<compile_context>
chip_gen: v5e
topology: v5e:2x2
jax: 0.10.0
libtpu: 0.0.40
codegen_flags: <defaults>
</compile_context>

<pallas_src>
import jax
import jax.numpy as jnp
import numpy as np
from jax.experimental import pallas as pl
from jax.experimental.pallas import tpu as pltpu

K = 4          # ConvTranspose2d kernel size
STRIDE = 2
PAD = 1
EPS = 1e-5     # torch InstanceNorm2d default (affine=False, biased variance)
COMPUTE_DTYPE = jnp.bfloat16   # MXU-native; accumulation stays f32

# Per output-row/col parity r: the two (padded-offset, kernel-index) taps that contribute.
# output index o = 2*a + r receives x[i] * W[k] with o = 2*i - 1 + k; offsets are into the
# 1-padded input (padded index = i + 1).
_TAPS = (
    ((0, 3), (1, 1)),   # r = 0: (i = a-1, k = 3), (i = a,   k = 1)
    ((1, 2), (2, 0)),   # r = 1: (i = a,   k = 2), (i = a+1, k = 0)
)


def unet_up_kernel(w_ref, p_ref, o_ref):
    # w_ref: (4, Cout, Cin*4)  bf16   per-parity weight matrices (same for every batch element)
    # p_ref: (4, Cin*4, H*W)   bf16   per-parity sub-pixel patches of one batch element
    # o_ref: (4, Cout, H*W)    f32    per-parity normalized+ReLU'd conv output (channels-major)
    n_par, cout, hw = o_ref.shape
    tot = jnp.zeros((cout, 1), jnp.float32)
    tot_sq = jnp.zeros((cout, 1), jnp.float32)
    ys = []
    for p in range(n_par):                                    # static unroll, n_par == 4
        y = jnp.dot(w_ref[p], p_ref[p],                       # MXU, f32 accumulation
                    preferred_element_type=jnp.float32)       # (Cout, H*W)
        tot = tot + jnp.sum(y, axis=1, keepdims=True)         # single-pass stats
        tot_sq = tot_sq + jnp.sum(y * y, axis=1, keepdims=True)
        ys.append(y)
    inv_n = 1.0 / float(n_par * hw)                           # full OH*OW per channel
    mean = tot * inv_n
    var = jnp.maximum(tot_sq * inv_n - mean * mean, 0.0)      # biased var, clamp >= 0
    scale = jax.lax.rsqrt(var + EPS)
    for p in range(n_par):
        o_ref[p] = jnp.maximum((ys[p] - mean) * scale, 0.0).astype(o_ref.dtype)


def _subpixel_patches_and_weights(x, w_t, compute_dtype):
    """x: (N, Cin, H, W); w_t: (Cin, Cout, 4, 4) (torch ConvTranspose2d layout).
    Returns patches (N, 4, Cin*4, H*W) and weights (4, Cout, Cin*4), parity order (rh, rw)."""
    N, Cin, H, W = x.shape
    Cout = w_t.shape[1]
    xp = jnp.pad(x, ((0, 0), (0, 0), (1, 1), (1, 1)))          # (N, Cin, H+2, W+2)
    pats, wmats = [], []
    for rh in range(2):
        for rw in range(2):
            slices, wsel = [], []
            for (r_off, kh) in _TAPS[rh]:
                for (c_off, kw) in _TAPS[rw]:
                    slices.append(xp[:, :, r_off:r_off + H, c_off:c_off + W])  # (N, Cin, H, W)
                    wsel.append(w_t[:, :, kh, kw])                             # (Cin, Cout)
            pmat = jnp.stack(slices, axis=2).reshape(N, Cin * 4, H * W)
            wmat = jnp.stack(wsel, axis=1).reshape(Cin * 4, Cout).T            # (Cout, Cin*4)
            pats.append(pmat)
            wmats.append(wmat)
    patches = jnp.stack(pats, axis=1).astype(compute_dtype)    # (N, 4, Cin*4, H*W)
    w2 = jnp.stack(wmats, axis=0).astype(compute_dtype)        # (4, Cout, Cin*4)
    return patches, w2


@jax.jit
def unet_up(x, skip, w_t):
    """x: (N, Cin, H, W); skip: (N, Cskip, 2H, 2W); w_t: (Cin, Cout, 4, 4) torch layout.
    Returns (N, Cout + Cskip, 2H, 2W) NCHW, matching PyTorch UNetUp.forward (dropout=0)."""
    N, Cin, H, W = x.shape
    Cout = w_t.shape[1]
    HW = H * W
    OH, OW = STRIDE * H, STRIDE * W
    Cin4 = Cin * 4

    patches, w2 = _subpixel_patches_and_weights(x, w_t, COMPUTE_DTYPE)

    # VMEM budget: double-buffered patch + output blocks, weights, in-kernel f32 y copies.
    patch_block = 4 * Cin4 * HW * patches.dtype.itemsize
    out_block = 4 * Cout * HW * 4
    w_bytes = w2.size * w2.dtype.itemsize
    needed = 2 * (patch_block + out_block) + w_bytes + 4 * Cout * HW * 4 + (4 << 20)
    vmem_limit = int(min(max(needed, 32 << 20), 64 << 20))

    cost = pl.CostEstimate(
        flops=2 * N * 4 * Cout * Cin4 * HW,
        transcendentals=0,
        bytes_accessed=patches.size * patches.dtype.itemsize
        + N * w_bytes + N * out_block,
    )

    out_par = pl.pallas_call(
        unet_up_kernel,
        out_shape=jax.ShapeDtypeStruct((N, 4, Cout, HW), jnp.float32),
        grid=(N,),
        in_specs=[
            pl.BlockSpec((4, Cout, Cin4), lambda n: (0, 0, 0)),
            pl.BlockSpec((None, 4, Cin4, HW), lambda n: (n, 0, 0, 0)),
        ],
        out_specs=pl.BlockSpec((None, 4, Cout, HW), lambda n: (n, 0, 0, 0)),
        compiler_params=pltpu.CompilerParams(
            dimension_semantics=("parallel",),
            vmem_limit_bytes=vmem_limit,
        ),
        cost_estimate=cost,
    )(w2, patches)

    # Parity interleave only: (N, rh, rw, Cout, H, W) -> (N, Cout, 2H, 2W) NCHW.
    y = (out_par.reshape(N, 2, 2, Cout, H, W)
         .transpose(0, 3, 4, 1, 5, 2)
         .reshape(N, Cout, OH, OW)
         .astype(x.dtype))
    # skip is a pure passthrough: concat stays in the wrapper (plain NCHW XLA concat).
    return jnp.concatenate([y, skip], axis=1)


def reference_f32(x, skip, w_t):
    """Pure-f32 reference mirroring torch ConvTranspose2d + InstanceNorm2d + ReLU + cat."""
    w_oihw = jnp.transpose(w_t, (1, 0, 2, 3))[:, :, ::-1, ::-1]
    y = jax.lax.conv_general_dilated(
        x, w_oihw, window_strides=(1, 1), padding=((2, 2), (2, 2)),
        lhs_dilation=(2, 2), dimension_numbers=("NCHW", "OIHW", "NCHW"))
    mean = y.mean(axis=(2, 3), keepdims=True)
    var = ((y - mean) ** 2).mean(axis=(2, 3), keepdims=True)
    y = jnp.maximum((y - mean) / jnp.sqrt(var + EPS), 0.0)
    return jnp.concatenate([y, skip], axis=1)


def reference_mixed(x, skip, w_t):
    """Same math with conv operands cast to the kernel compute dtype (bf16) + f32 accumulation,
    to validate the Pallas decomposition/norm tightly."""
    w_oihw = jnp.transpose(w_t, (1, 0, 2, 3))[:, :, ::-1, ::-1].astype(COMPUTE_DTYPE)
    y = jax.lax.conv_general_dilated(
        x.astype(COMPUTE_DTYPE), w_oihw, window_strides=(1, 1), padding=((2, 2), (2, 2)),
        lhs_dilation=(2, 2), dimension_numbers=("NCHW", "OIHW", "NCHW"),
        preferred_element_type=jnp.float32)
    mean = y.mean(axis=(2, 3), keepdims=True)
    var = ((y - mean) ** 2).mean(axis=(2, 3), keepdims=True)
    y = jnp.maximum((y - mean) / jnp.sqrt(var + EPS), 0.0)
    return jnp.concatenate([y, skip], axis=1)


if __name__ == "__main__":
    # small shapes: batch=2, in_size=8, out_size=8, spatial 8x8 -> 16x16
    N, IN_SIZE, OUT_SIZE, H, W = 2, 8, 8, 8, 8

    key = jax.random.PRNGKey(0)
    kx, ks, kw = jax.random.split(key, 3)
    x = jax.random.normal(kx, (N, IN_SIZE, H, W), jnp.float32)
    skip = jax.random.normal(ks, (N, OUT_SIZE, 2 * H, 2 * W), jnp.float32)
    # deterministic ConvTranspose2d weight, torch layout (in_size, out_size, 4, 4), bias=False
    w_t = 0.1 * jax.random.normal(kw, (IN_SIZE, OUT_SIZE, K, K), jnp.float32)
    # TODO(synk): Dropout branch omitted (module default dropout=0.0 -> no dropout layer).

    out = jax.block_until_ready(unet_up(x, skip, w_t))
    assert out.shape == (N, 2 * OUT_SIZE, 2 * H, 2 * W), out.shape

    # Tight check vs a reference using the same mixed precision (validates the kernel itself).
    ref_mixed = jax.block_until_ready(reference_mixed(x, skip, w_t))
    np.testing.assert_allclose(np.asarray(out), np.asarray(ref_mixed), rtol=1e-3, atol=1e-3)

    # Loose check vs full-f32 torch semantics (bf16 operand rounding is the only difference).
    ref_f32 = jax.block_until_ready(reference_f32(x, skip, w_t))
    np.testing.assert_allclose(np.asarray(out), np.asarray(ref_f32), rtol=2e-2, atol=2e-2)

    print("KERNEL_OK")
</pallas_src>

<mosaic_0001>
module attributes {stable_mosaic.version = 11 : i64} {
  func.func @unet_up_kernel(%arg0: i32, %arg1: memref<4x8x32xbf16, #tpu.memory_space<vmem>>, %arg2: memref<1x4x32x64xbf16, #tpu.memory_space<vmem>>, %arg3: memref<1x4x8x64xf32, #tpu.memory_space<vmem>>) attributes {dimension_semantics = [#tpu.dimension_semantics<parallel>], iteration_bounds = array<i64: 2>, scalar_prefetch = 0 : i64, scratch_operands = 0 : i64, tpu.core_type = #tpu.core_type<tc>, window_params = [{pipeline_mode = #tpu.pipeline_mode<synchronous>, transform_indices = @transform_0, window_bounds = array<i64: 4, 8, 32>}, {transform_indices = @transform_1, window_bounds = array<i64: 1, 4, 32, 64>}, {transform_indices = @transform_2, window_bounds = array<i64: 1, 4, 8, 64>}]} {
    %cst = arith.constant 0.000000e+00 : f32
    %0 = vector.broadcast %cst : f32 to vector<8x1xf32>
    %cst_0 = arith.constant 0.000000e+00 : f32
    %1 = vector.broadcast %cst_0 : f32 to vector<8x1xf32>
    %c0 = arith.constant 0 : index
    %c0_1 = arith.constant 0 : index
    %c0_2 = arith.constant 0 : index
    %2 = vector.load %arg1[%c0, %c0_1, %c0_2] : memref<4x8x32xbf16, #tpu.memory_space<vmem>>, vector<1x8x32xbf16>
    %3 = vector.shape_cast %2 : vector<1x8x32xbf16> to vector<8x32xbf16>
    %c0_3 = arith.constant 0 : index
    %c0_4 = arith.constant 0 : index
    %c0_5 = arith.constant 0 : index
    %c0_6 = arith.constant 0 : index
    %4 = vector.load %arg2[%c0_3, %c0_4, %c0_5, %c0_6] : memref<1x4x32x64xbf16, #tpu.memory_space<vmem>>, vector<1x1x32x64xbf16>
    %5 = vector.shape_cast %4 : vector<1x1x32x64xbf16> to vector<32x64xbf16>
    %cst_7 = arith.constant dense<0.000000e+00> : vector<8x64xf32>
    %6 = tpu.matmul %3, %5, %cst_7 {dimension_numbers = #tpu.dot_dimension_numbers<[1], [0], [0], [1], [0, 0, 1, 1], [], []>} : vector<8x32xbf16>, vector<32x64xbf16>, vector<8x64xf32> -> vector<8x64xf32>
    %cst_8 = arith.constant dense<0.000000e+00> : vector<8xf32>
    %7 = vector.multi_reduction <add>, %6, %cst_8 [1] : vector<8x64xf32> to vector<8xf32>
    %8 = vector.shape_cast %7 : vector<8xf32> to vector<8x1xf32>
    %9 = arith.addf %0, %8 : vector<8x1xf32>
    %10 = arith.mulf %6, %6 : vector<8x64xf32>
    %cst_9 = arith.constant dense<0.000000e+00> : vector<8xf32>
    %11 = vector.multi_reduction <add>, %10, %cst_9 [1] : vector<8x64xf32> to vector<8xf32>
    %12 = vector.shape_cast %11 : vector<8xf32> to vector<8x1xf32>
    %13 = arith.addf %1, %12 : vector<8x1xf32>
    %c1 = arith.constant 1 : index
    %c0_10 = arith.constant 0 : index
    %c0_11 = arith.constant 0 : index
    %14 = vector.load %arg1[%c1, %c0_10, %c0_11] : memref<4x8x32xbf16, #tpu.memory_space<vmem>>, vector<1x8x32xbf16>
    %15 = vector.shape_cast %14 : vector<1x8x32xbf16> to vector<8x32xbf16>
    %c0_12 = arith.constant 0 : index
    %c1_13 = arith.constant 1 : index
    %c0_14 = arith.constant 0 : index
    %c0_15 = arith.constant 0 : index
    %16 = vector.load %arg2[%c0_12, %c1_13, %c0_14, %c0_15] : memref<1x4x32x64xbf16, #tpu.memory_space<vmem>>, vector<1x1x32x64xbf16>
    %17 = vector.shape_cast %16 : vector<1x1x32x64xbf16> to vector<32x64xbf16>
    %cst_16 = arith.constant dense<0.000000e+00> : vector<8x64xf32>
    %18 = tpu.matmul %15, %17, %cst_16 {dimension_numbers = #tpu.dot_dimension_numbers<[1], [0], [0], [1], [0, 0, 1, 1], [], []>} : vector<8x32xbf16>, vector<32x64xbf16>, vector<8x64xf32> -> vector<8x64xf32>
    %cst_17 = arith.constant dense<0.000000e+00> : vector<8xf32>
    %19 = vector.multi_reduction <add>, %18, %cst_17 [1] : vector<8x64xf32> to vector<8xf32>
    %20 = vector.shape_cast %19 : vector<8xf32> to vector<8x1xf32>
    %21 = arith.addf %9, %20 : vector<8x1xf32>
    %22 = arith.mulf %18, %18 : vector<8x64xf32>
    %cst_18 = arith.constant dense<0.000000e+00> : vector<8xf32>
    %23 = vector.multi_reduction <add>, %22, %cst_18 [1] : vector<8x64xf32> to vector<8xf32>
    %24 = vector.shape_cast %23 : vector<8xf32> to vector<8x1xf32>
    %25 = arith.addf %13, %24 : vector<8x1xf32>
    %c2 = arith.constant 2 : index
    %c0_19 = arith.constant 0 : index
    %c0_20 = arith.constant 0 : index
    %26 = vector.load %arg1[%c2, %c0_19, %c0_20] : memref<4x8x32xbf16, #tpu.memory_space<vmem>>, vector<1x8x32xbf16>
    %27 = vector.shape_cast %26 : vector<1x8x32xbf16> to vector<8x32xbf16>
    %c0_21 = arith.constant 0 : index
    %c2_22 = arith.constant 2 : index
    %c0_23 = arith.constant 0 : index
    %c0_24 = arith.constant 0 : index
    %28 = vector.load %arg2[%c0_21, %c2_22, %c0_23, %c0_24] : memref<1x4x32x64xbf16, #tpu.memory_space<vmem>>, vector<1x1x32x64xbf16>
    %29 = vector.shape_cast %28 : vector<1x1x32x64xbf16> to vector<32x64xbf16>
    %cst_25 = arith.constant dense<0.000000e+00> : vector<8x64xf32>
    %30 = tpu.matmul %27, %29, %cst_25 {dimension_numbers = #tpu.dot_dimension_numbers<[1], [0], [0], [1], [0, 0, 1, 1], [], []>} : vector<8x32xbf16>, vector<32x64xbf16>, vector<8x64xf32> -> vector<8x64xf32>
    %cst_26 = arith.constant dense<0.000000e+00> : vector<8xf32>
    %31 = vector.multi_reduction <add>, %30, %cst_26 [1] : vector<8x64xf32> to vector<8xf32>
    %32 = vector.shape_cast %31 : vector<8xf32> to vector<8x1xf32>
    %33 = arith.addf %21, %32 : vector<8x1xf32>
    %34 = arith.mulf %30, %30 : vector<8x64xf32>
    %cst_27 = arith.constant dense<0.000000e+00> : vector<8xf32>
    %35 = vector.multi_reduction <add>, %34, %cst_27 [1] : vector<8x64xf32> to vector<8xf32>
    %36 = vector.shape_cast %35 : vector<8xf32> to vector<8x1xf32>
    %37 = arith.addf %25, %36 : vector<8x1xf32>
    %c3 = arith.constant 3 : index
    %c0_28 = arith.constant 0 : index
    %c0_29 = arith.constant 0 : index
    %38 = vector.load %arg1[%c3, %c0_28, %c0_29] : memref<4x8x32xbf16, #tpu.memory_space<vmem>>, vector<1x8x32xbf16>
    %39 = vector.shape_cast %38 : vector<1x8x32xbf16> to vector<8x32xbf16>
    %c0_30 = arith.constant 0 : index
    %c3_31 = arith.constant 3 : index
    %c0_32 = arith.constant 0 : index
    %c0_33 = arith.constant 0 : index
    %40 = vector.load %arg2[%c0_30, %c3_31, %c0_32, %c0_33] : memref<1x4x32x64xbf16, #tpu.memory_space<vmem>>, vector<1x1x32x64xbf16>
    %41 = vector.shape_cast %40 : vector<1x1x32x64xbf16> to vector<32x64xbf16>
    %cst_34 = arith.constant dense<0.000000e+00> : vector<8x64xf32>
    %42 = tpu.matmul %39, %41, %cst_34 {dimension_numbers = #tpu.dot_dimension_numbers<[1], [0], [0], [1], [0, 0, 1, 1], [], []>} : vector<8x32xbf16>, vector<32x64xbf16>, vector<8x64xf32> -> vector<8x64xf32>
    %cst_35 = arith.constant dense<0.000000e+00> : vector<8xf32>
    %43 = vector.multi_reduction <add>, %42, %cst_35 [1] : vector<8x64xf32> to vector<8xf32>
    %44 = vector.shape_cast %43 : vector<8xf32> to vector<8x1xf32>
    %45 = arith.addf %33, %44 : vector<8x1xf32>
    %46 = arith.mulf %42, %42 : vector<8x64xf32>
    %cst_36 = arith.constant dense<0.000000e+00> : vector<8xf32>
    %47 = vector.multi_reduction <add>, %46, %cst_36 [1] : vector<8x64xf32> to vector<8xf32>
    %48 = vector.shape_cast %47 : vector<8xf32> to vector<8x1xf32>
    %49 = arith.addf %37, %48 : vector<8x1xf32>
    %cst_37 = arith.constant 3.906250e-03 : f32
    %50 = vector.broadcast %cst_37 : f32 to vector<8x1xf32>
    %51 = arith.mulf %45, %50 : vector<8x1xf32>
    %cst_38 = arith.constant 3.906250e-03 : f32
    %52 = vector.broadcast %cst_38 : f32 to vector<8x1xf32>
    %53 = arith.mulf %49, %52 : vector<8x1xf32>
    %54 = arith.mulf %51, %51 : vector<8x1xf32>
    %55 = arith.subf %53, %54 : vector<8x1xf32>
    %cst_39 = arith.constant 0.000000e+00 : f32
    %56 = vector.broadcast %cst_39 : f32 to vector<8x1xf32>
    %57 = arith.maximumf %55, %56 : vector<8x1xf32>
    %cst_40 = arith.constant 9.99999974E-6 : f32
    %58 = vector.broadcast %cst_40 : f32 to vector<8x1xf32>
    %59 = arith.addf %57, %58 : vector<8x1xf32>
    %60 = math.rsqrt %59 : vector<8x1xf32>
    %61 = vector.broadcast %51 : vector<8x1xf32> to vector<8x64xf32>
    %62 = arith.subf %6, %61 : vector<8x64xf32>
    %63 = vector.broadcast %60 : vector<8x1xf32> to vector<8x64xf32>
    %64 = arith.mulf %62, %63 : vector<8x64xf32>
    %cst_41 = arith.constant 0.000000e+00 : f32
    %65 = vector.broadcast %cst_41 : f32 to vector<8x64xf32>
    %66 = arith.maximumf %64, %65 : vector<8x64xf32>
    %c0_42 = arith.constant 0 : index
    %c0_43 = arith.constant 0 : index
    %c0_44 = arith.constant 0 : index
    %c0_45 = arith.constant 0 : index
    %67 = vector.load %arg3[%c0_42, %c0_43, %c0_44, %c0_45] : memref<1x4x8x64xf32, #tpu.memory_space<vmem>>, vector<1x1x8x64xf32>
    %68 = vector.shape_cast %67 : vector<1x1x8x64xf32> to vector<8x64xf32>
    %69 = vector.shape_cast %66 : vector<8x64xf32> to vector<1x1x8x64xf32>
    tpu.vector_store %arg3[%c0_42, %c0_43, %c0_44, %c0_45], %69 {strides = array<i32>} : memref<1x4x8x64xf32, #tpu.memory_space<vmem>>, vector<1x1x8x64xf32>,
    %70 = vector.broadcast %51 : vector<8x1xf32> to vector<8x64xf32>
    %71 = arith.subf %18, %70 : vector<8x64xf32>
    %72 = vector.broadcast %60 : vector<8x1xf32> to vector<8x64xf32>
    %73 = arith.mulf %71, %72 : vector<8x64xf32>
    %cst_46 = arith.constant 0.000000e+00 : f32
    %74 = vector.broadcast %cst_46 : f32 to vector<8x64xf32>
    %75 = arith.maximumf %73, %74 : vector<8x64xf32>
    %c0_47 = arith.constant 0 : index
    %c1_48 = arith.constant 1 : index
    %c0_49 = arith.constant 0 : index
    %c0_50 = arith.constant 0 : index
    %76 = vector.load %arg3[%c0_47, %c1_48, %c0_49, %c0_50] : memref<1x4x8x64xf32, #tpu.memory_space<vmem>>, vector<1x1x8x64xf32>
    %77 = vector.shape_cast %76 : vector<1x1x8x64xf32> to vector<8x64xf32>
    %78 = vector.shape_cast %75 : vector<8x64xf32> to vector<1x1x8x64xf32>
    tpu.vector_store %arg3[%c0_47, %c1_48, %c0_49, %c0_50], %78 {strides = array<i32>} : memref<1x4x8x64xf32, #tpu.memory_space<vmem>>, vector<1x1x8x64xf32>,
    %79 = vector.broadcast %51 : vector<8x1xf32> to vector<8x64xf32>
    %80 = arith.subf %30, %79 : vector<8x64xf32>
    %81 = vector.broadcast %60 : vector<8x1xf32> to vector<8x64xf32>
    %82 = arith.mulf %80, %81 : vector<8x64xf32>
    %cst_51 = arith.constant 0.000000e+00 : f32
    %83 = vector.broadcast %cst_51 : f32 to vector<8x64xf32>
    %84 = arith.maximumf %82, %83 : vector<8x64xf32>
    %c0_52 = arith.constant 0 : index
    %c2_53 = arith.constant 2 : index
    %c0_54 = arith.constant 0 : index
    %c0_55 = arith.constant 0 : index
    %85 = vector.load %arg3[%c0_52, %c2_53, %c0_54, %c0_55] : memref<1x4x8x64xf32, #tpu.memory_space<vmem>>, vector<1x1x8x64xf32>
    %86 = vector.shape_cast %85 : vector<1x1x8x64xf32> to vector<8x64xf32>
    %87 = vector.shape_cast %84 : vector<8x64xf32> to vector<1x1x8x64xf32>
    tpu.vector_store %arg3[%c0_52, %c2_53, %c0_54, %c0_55], %87 {strides = array<i32>} : memref<1x4x8x64xf32, #tpu.memory_space<vmem>>, vector<1x1x8x64xf32>,
    %88 = vector.broadcast %51 : vector<8x1xf32> to vector<8x64xf32>
    %89 = arith.subf %42, %88 : vector<8x64xf32>
    %90 = vector.broadcast %60 : vector<8x1xf32> to vector<8x64xf32>
    %91 = arith.mulf %89, %90 : vector<8x64xf32>
    %cst_56 = arith.constant 0.000000e+00 : f32
    %92 = vector.broadcast %cst_56 : f32 to vector<8x64xf32>
    %93 = arith.maximumf %91, %92 : vector<8x64xf32>
    %c0_57 = arith.constant 0 : index
    %c3_58 = arith.constant 3 : index
    %c0_59 = arith.constant 0 : index
    %c0_60 = arith.constant 0 : index
    %94 = vector.load %arg3[%c0_57, %c3_58, %c0_59, %c0_60] : memref<1x4x8x64xf32, #tpu.memory_space<vmem>>, vector<1x1x8x64xf32>
    %95 = vector.shape_cast %94 : vector<1x1x8x64xf32> to vector<8x64xf32>
    %96 = vector.shape_cast %93 : vector<8x64xf32> to vector<1x1x8x64xf32>
    tpu.vector_store %arg3[%c0_57, %c3_58, %c0_59, %c0_60], %96 {strides = array<i32>} : memref<1x4x8x64xf32, #tpu.memory_space<vmem>>, vector<1x1x8x64xf32>,
    return
  }
  func.func @transform_0(%arg0: i32) -> (i32, i32, i32) {
    %c0_i32 = arith.constant 0 : i32
    %c0_i32_0 = arith.constant 0 : i32
    %c0_i32_1 = arith.constant 0 : i32
    %c0_i32_2 = arith.constant 0 : i32
    return %c0_i32, %c0_i32_0, %c0_i32_1 : i32, i32, i32
  }
  func.func @transform_1(%arg0: i32) -> (i32, i32, i32, i32) {
    %c0_i32 = arith.constant 0 : i32
    %c0_i32_0 = arith.constant 0 : i32
    %c0_i32_1 = arith.constant 0 : i32
    %c0_i32_2 = arith.constant 0 : i32
    return %arg0, %c0_i32, %c0_i32_0, %c0_i32_1 : i32, i32, i32, i32
  }
  func.func @transform_2(%arg0: i32) -> (i32, i32, i32, i32) {
    %c0_i32 = arith.constant 0 : i32
    %c0_i32_0 = arith.constant 0 : i32
    %c0_i32_1 = arith.constant 0 : i32
    %c0_i32_2 = arith.constant 0 : i32
    return %arg0, %c0_i32, %c0_i32_0, %c0_i32_1 : i32, i32, i32, i32
  }
}

</mosaic_0001>

<bundles_post_ra>
// kernel: unet_up.1
= control target key start
LH: loop header
LB: loop body
LE: loop exit
PB: predicated region body
PF: predicated region fallthrough
CT: control target
= control target key end

     0   :  { %s519_s9 = smov 0   ;;  %s576_s0 = inlined_call_operand.vmem [shape: bf16[4,8,32], index: 0, kind: input, shape index: {}]   ;;  %s577_s1 = inlined_call_operand.vmem [shape: bf16[2,4,32,64], index: 1, kind: input, shape index: {}]   ;;  %s578_s2 = inlined_call_operand.vmem [shape: f32[2,4,8,64], index: 2, kind: output, shape index: {}]  }
   0x1 LB: > { %s411_s10 = sadd.s32 4294967295, %s502_s9   ;;  %p415_p0 = scmp.ge.s32.totalorder %s502_s9, 1  ;;  %s502_s9 = sphi %s519_s9, %s12_s9  }
   0x2   : > { %p112_p1 = scmp.lt.s32.totalorder %s502_s9, 3 }
   0x4   : > { %p113_p2 = pnand %p415_p0, %p112_p1 }
   0x5   : > { %p134_p3 = scmp.lt.s32.totalorder (!%p113_p2), %s411_s10, 1 }
   0x6   : > { %116 = sbr.rel (%p113_p2) target bundleno = 319 (0x13f), region = 28 }
   0xb   : > { %s580_s10 = smov (!%p134_p3, %s411_s10), 1  ;;  %v145_v8 = vld [vmem:[%s576_s0] sm:$0xf]  ;;  %vm162_vm0 = vcmask 261120   ;;  %v429_v9 = vld [vmem:[%s576_s0 + $0x4] sm:$0xf] }
   0xc   : > { %s476_s11 = sshll.u32 %s580_s10, 6  ;;  %v443_v10 = vld [vmem:[%s576_s0 + $0x8] sm:$0xf]  ;;  %v457_v11 = vld [vmem:[%s576_s0 + $0xc] sm:$0xf]  ;;  %vm179_vm1 = vcmask 523264  }
   0xd   : > { %s138_s14 = scalar_lea.vmem %s577_s1, %s476_s11  ;;  %s477_s23 = sshll.u32 %s580_s10, 5 }
   0xe   : > { %v479_v0 = vld [vmem:[%s138_s14 + $0x8] sm:$0xff]  ;;  %v481_v1 = vld [vmem:[%s138_s14 + $0x18] sm:$0xff]  ;;  %v478_v4 = vld [vmem:[%s138_s14] sm:$0xff]  ;;  %s143_s26 = scalar_lea.vmem %s578_s2, %s477_s23 }
   0xf   : > { %v483_v2 = vld [vmem:[%s138_s14 + $0x28] sm:$0xff]  ;;  %v485_v3 = vld [vmem:[%s138_s14 + $0x38] sm:$0xff]  ;;  %172 = vmatpush.bf16.msra.mxu0 %v479_v0  ;;  %217 = vmatpush.bf16.msra.mxu1 %v481_v1  ;;  %v480_v5 = vld [vmem:[%s138_s14 + $0x10] sm:$0xff] }
  0x10   : > { %261 = vmatpush.bf16.msra.mxu2 %v483_v2  ;;  %305 = vmatpush.bf16.msra.mxu3 %v485_v3  ;;  %v482_v6 = vld [vmem:[%s138_s14 + $0x20] sm:$0xff]  ;;  %v484_v7 = vld [vmem:[%s138_s14 + $0x30] sm:$0xff] }
  0x13   : > { %173 = vmatpush.bf16.msra.mxu0 %v478_v4  ;;  %218 = vmatpush.bf16.msra.mxu1 %v480_v5 }
  0x14   : > { %262 = vmatpush.bf16.msra.mxu2 %v482_v6  ;;  %306 = vmatpush.bf16.msra.mxu3 %v484_v7 }
  0x16   : > { %428 = vmatmul.msk.bf16.vlgmr.msra.gmra.mxu0 %vm162_vm0, %v145_v8  ;;  %442 = vmatmul.msk.bf16.vlgmr.msra.gmra.mxu1 %vm162_vm0, %v429_v9 }
  0x17   : > { %456 = vmatmul.msk.bf16.vlgmr.msra.gmra.mxu2 %vm162_vm0, %v443_v10  ;;  %470 = vmatmul.msk.bf16.vlgmr.msra.gmra.mxu3 %vm162_vm0, %v457_v11 }
  0x93   : > { %v545_v12 = vpop.f32.mrf.mxu0  ;;  %v547_v13 = vpop.f32.mrf.mxu1 }
  0x94   : > { %v180_v14 = vsel %vm179_vm1, %v545_v12, 0.0  ;;  %v184_v15 = vmul.f32 %v545_v12, %v545_v12  ;;  %v228_v17 = vmul.f32 %v547_v13, %v547_v13  ;;  %v224_v20 = vsel %vm179_vm1, %v547_v13, 0.0 }
  0x95   : > { %181 = vadd.xlane.f32.xlu0 %v180_v14 }
  0x96   : > { %v185_v16 = vsel %vm179_vm1, %v184_v15, 0.0  ;;  %v229_v24 = vsel %vm179_vm1, %v228_v17, 0.0 }
  0x97   : > { %186 = vadd.xlane.f32.xlu1 %v185_v16 }
  0x9a   : > { %v264_v18 = vpop.f32.mrf.mxu2  ;;  %v308_v19 = vpop.f32.mrf.mxu3 }
  0x9b   : > { %v268_v21 = vsel %vm179_vm1, %v264_v18, 0.0  ;;  %v177_v22 = vpop.f32.mrf.mxu0  ;;  %v222_v23 = vpop.f32.mrf.mxu1  ;;  %v272_v25 = vmul.f32 %v264_v18, %v264_v18  ;;  %v316_v26 = vmul.f32 %v308_v19, %v308_v19  ;;  %v312_v29 = vsel %vm179_vm1, %v308_v19, 0.0 }
  0x9c   : > { %269 = vadd.xlane.f32.xlu2 %v268_v21 }
  0x9d   : > { %225 = vadd.xlane.f32.xlu0 %v224_v20  ;;  %v273_v30 = vsel %vm179_vm1, %v272_v25, 0.0  ;;  %v317_v31 = vsel %vm179_vm1, %v316_v26, 0.0 }
  0x9f   : > { %230 = vadd.xlane.f32.xlu1 %v229_v24 }
  0xa2   : > { %v266_v27 = vpop.f32.mrf.mxu2  ;;  %v310_v28 = vpop.f32.mrf.mxu3 }
  0xa4   : > { %274 = vadd.xlane.f32.xlu2 %v273_v30 }
  0xa5   : > { %313 = vadd.xlane.f32.xlu0 %v312_v29 }
  0xa7   : > { %318 = vadd.xlane.f32.xlu1 %v317_v31 }
 0x108   : > { %v182_v32 = vpop.xlane.xlu0 %181 }
 0x10a   : > { %v187_v33 = vpop.xlane.xlu1 %186 }
 0x10f   : > { %v270_v34 = vpop.xlane.xlu2 %269 }
 0x110   : > { %v226_v35 = vpop.xlane.xlu0 %225 }
 0x111   : > { %v227_v37 = vadd.f32 %v226_v35, %v182_v32 }
 0x112   : > { %v231_v36 = vpop.xlane.xlu1 %230 }
 0x113   : > { %v232_v38 = vadd.f32 %v231_v36, %v187_v33  ;;  %v271_v40 = vadd.f32 %v270_v34, %v227_v37 }
 0x117   : > { %v275_v39 = vpop.xlane.xlu2 %274 }
 0x118   : > { %v314_v41 = vpop.xlane.xlu0 %313  ;;  %v276_v42 = vadd.f32 %v275_v39, %v232_v38 }
 0x119   : > { %v315_v43 = vadd.f32 %v314_v41, %v271_v40 }
 0x11a   : > { %v319_v44 = vpop.xlane.xlu1 %318 }
 0x11b   : > { %v321_v45 = vmul.f32 0.00390625, %v315_v43  ;;  %v320_v46 = vadd.f32 %v319_v44, %v276_v42 }
 0x11d   : > { %v322_v47 = vmul.f32 0.00390625, %v320_v46  ;;  %v323_v48 = vmul.f32 %v321_v45, %v321_v45  ;;  %v337_v58 = vsub.f32 %v545_v12, %v321_v45  ;;  %v341_v59 = vsub.f32 %v547_v13, %v321_v45 }
 0x11e   : > { %v346_v60 = vsub.f32 %v264_v18, %v321_v45  ;;  %v351_v61 = vsub.f32 %v308_v19, %v321_v45 }
 0x11f   : > { %v324_v49 = vsub.f32 %v322_v47, %v323_v48 }
 0x121   : > { %v325_v50 = vmax.f32 %v324_v49, 0.0 }
 0x123   : > { %v326_v51 = vadd.f32 1e-05, %v325_v50 }
 0x125   : > { %494 = vrsqrt.f32 %v326_v51  ;;  %vm333_vm3 = vweird.f32 %v326_v51 }
 0x12b   : > { %v495_v52 = vpop.eup %494 }
 0x12c   : > { %v328_v53 = vmul.f32 %v495_v52, %v326_v51  ;;  %vm334_vm2 = vweird.f32 %v495_v52 }
 0x12d   : > { %vm335_vm4 = vmor %vm333_vm3, %vm334_vm2 }
 0x12e   : > { %v329_v54 = vmul.f32 %v495_v52, %v328_v53 }
 0x130   : > { %v330_v55 = vmul.f32 0.5, %v329_v54 }
 0x132   : > { %v331_v56 = vsub.f32 1.5, %v330_v55 }
 0x134   : > { %v332_v57 = vmul.f32 %v495_v52, %v331_v56 }
 0x136   : > { %v336_v62 = vsel %vm335_vm4, %v495_v52, %v332_v57 }
 0x137   : > { %v338_v63 = vmul.f32 %v337_v58, %v336_v62  ;;  %v342_v0 = vmul.f32 %v341_v59, %v336_v62  ;;  %v347_v1 = vmul.f32 %v346_v60, %v336_v62  ;;  %v352_v2 = vmul.f32 %v351_v61, %v336_v62 }
 0x139   : > { %v339_v3 = vmax.f32 %v338_v63, 0.0  ;;  %v343_v4 = vmax.f32 %v342_v0, 0.0  ;;  %v348_v5 = vmax.f32 %v347_v1, 0.0  ;;  %v353_v6 = vmax.f32 %v352_v2, 0.0 }
 0x13b   : > { %340 = vst.msk [vmem:[%s143_s26] sm:$0xff] %vm179_vm1, %v339_v3 }
 0x13c   : > { %471 = vst.msk [vmem:[%s143_s26 + $0x8] sm:$0xff] %vm179_vm1, %v343_v4 }
 0x13d   : > { %472 = vst.msk [vmem:[%s143_s26 + $0x10] sm:$0xff] %vm179_vm1, %v348_v5 }
 0x13e   : > { %473 = vst.msk [vmem:[%s143_s26 + $0x18] sm:$0xff] %vm179_vm1, %v353_v6 }
 0x13f PF: > { %s12_s9 = sadd.s32 1, %s502_s9  }
 0x140   : > { %p9_p4 = scmp.ge.s32.totalorder %s12_s9, 4  }
 0x142   :  { %11 = sbr.rel (!%p9_p4) target bundleno = 1 (0x1), region = 67 }

</bundles_post_ra>
